<compile_context>
chip_gen: v6e
topology: v6e:2x2x1
jax: 0.10.0
libtpu: 0.0.40
codegen_flags: <defaults>
</compile_context>

<pallas_src>
import math

import jax
import jax.numpy as jnp
from jax.experimental import pallas as pl
from jax.experimental.pallas import tpu as pltpu

F32 = jnp.float32
BF16 = jnp.bfloat16
BN_EPS = 1e-5                      # torch BatchNorm2d default eps


def _pick_lane_tile(m):
    """Largest multiple-of-128 divisor of m (capped at 2048); else the full extent."""
    for t in (2048, 1024, 512, 256, 128):
        if m % t == 0:
            return t
    return m


# ------------------------------------------------------------------ fused conv + BN-bias kernel
def _conv_bn_kernel(a_ref, w_ref, b_ref, o_ref):
    # a_ref: (K, tl) activations (f32 or bf16); w_ref: (Cout_g, K) bf16 (BN scale pre-folded);
    # b_ref: (Cout_g, 1) f32 BN bias; o_ref: (Cout_g, tl) f32.
    acc = jnp.dot(w_ref[...], a_ref[...].astype(BF16),
                  preferred_element_type=jnp.float32)
    o_ref[...] = (acc + b_ref[...]).astype(o_ref.dtype)


def _conv_bn_matmul(a, w, bias, tl):
    """a: (B, G, K, M); w: (G, Cout_g, K) bf16; bias: (G, Cout_g, 1) f32 -> (B, G, Cout_g, M) f32."""
    B, G, K, M = a.shape
    _, Cout_g, _ = w.shape
    assert M % tl == 0
    m_tiles = M // tl

    # VMEM budget from the actual (double-buffered) block sizes; capped for v7x's 64 MiB.
    a_blk = K * tl * a.dtype.itemsize
    w_blk = Cout_g * K * 2
    b_blk = Cout_g * 4
    o_blk = Cout_g * tl * 4
    need = 2 * (a_blk + w_blk + b_blk + o_blk)
    vmem_limit = int(min(max(4 * need, 32 << 20), 64 << 20))

    cost = pl.CostEstimate(
        flops=2 * B * G * Cout_g * K * M,
        transcendentals=0,
        bytes_accessed=(B * G * K * M * a.dtype.itemsize        # A read once
                        + B * m_tiles * G * Cout_g * K * 2      # W re-read per (b, m-tile)
                        + B * m_tiles * G * Cout_g * 4          # bias re-read per (b, m-tile)
                        + B * G * Cout_g * M * 4),              # output writes
    )

    return pl.pallas_call(
        _conv_bn_kernel,
        out_shape=jax.ShapeDtypeStruct((B, G, Cout_g, M), F32),
        grid_spec=pltpu.PrefetchScalarGridSpec(
            num_scalar_prefetch=0,
            grid=(B, G, m_tiles),
            in_specs=[
                pl.BlockSpec((None, None, K, tl), lambda b, g, m: (b, g, 0, m)),   # activations
                pl.BlockSpec((None, Cout_g, K), lambda b, g, m: (g, 0, 0)),        # folded weights
                pl.BlockSpec((None, Cout_g, 1), lambda b, g, m: (g, 0, 0)),        # BN bias
            ],
            out_specs=pl.BlockSpec((None, None, Cout_g, tl), lambda b, g, m: (b, g, 0, m)),
        ),
        compiler_params=pltpu.CompilerParams(
            dimension_semantics=("parallel", "parallel", "parallel"),
            vmem_limit_bytes=vmem_limit,
        ),
        cost_estimate=cost,
    )(a, w, bias)


# ---------------------------------------------------------------------------- Linear_block builder
def make_linear_block(conv_w, bn, *, kernel=(1, 1), stride=(1, 1), padding=(0, 0), groups=1):
    """Returns a jitted forward(x_nchw) matching Linear_block.forward in eval mode."""
    conv_w = jnp.asarray(conv_w, F32)                             # (Cout, Cin_g, KH, KW)
    Cout, Cin_g, KH, KW = conv_w.shape
    assert (KH, KW) == tuple(kernel)
    assert Cout % groups == 0
    Cout_g = Cout // groups
    K = Cin_g * KH * KW

    gamma = jnp.asarray(bn['gamma'], F32)
    beta = jnp.asarray(bn['beta'], F32)
    mean = jnp.asarray(bn['mean'], F32)
    var = jnp.asarray(bn['var'], F32)
    # TODO(synk): training-mode BatchNorm2d (batch statistics) not implemented; eval-mode BN
    # is folded into the conv weights (scale) and the kernel epilogue (bias).
    scale = gamma / jnp.sqrt(var + BN_EPS)
    bias = beta - mean * scale

    # Fold the BN scale into the weights ONCE at build time (f32 multiply, then one bf16 cast).
    w_mat = conv_w.reshape(Cout, K) * scale[:, None]              # (Cout, K) f32
    w_g = w_mat.reshape(groups, Cout_g, K).astype(BF16)           # (G, Cout_g, K) bf16
    bias_g = bias.reshape(groups, Cout_g, 1)                      # (G, Cout_g, 1) f32

    sh, sw = stride
    ph, pw = padding
    pointwise = (KH, KW) == (1, 1) and (sh, sw) == (1, 1) and (ph, pw) == (0, 0)

    @jax.jit
    def forward(x_nchw):
        B, Cin, H, W = x_nchw.shape
        assert Cin == Cin_g * groups
        if pointwise:
            Ho, Wo = H, W
            # Zero-copy reshape straight off NCHW; the bf16 cast happens inside the kernel.
            a = x_nchw.astype(F32).reshape(B, groups, Cin_g, H * W)
        else:
            Ho = (H + 2 * ph - KH) // sh + 1
            Wo = (W + 2 * pw - KW) // sw + 1
            xp = x_nchw.astype(F32)
            if ph or pw:
                xp = jnp.pad(xp, ((0, 0), (0, 0), (ph, ph), (pw, pw)))
            xb = xp.astype(BF16)                                  # one cast, fused with the pad
            # TODO(synk): for stride-1 KxK the tap walk could be grid-driven (pl.Element offsets)
            # instead of materializing the (K, Ho*Wo) patch tensor; materialized once here in bf16.
            taps = [xb[:, :, kh:kh + sh * (Ho - 1) + 1:sh, kw:kw + sw * (Wo - 1) + 1:sw]
                    for kh in range(KH) for kw in range(KW)]
            patches = jnp.stack(taps, axis=2)                     # (B, Cin, KH*KW, Ho, Wo)
            a = patches.reshape(B, groups, K, Ho * Wo)            # K-order (cin, kh, kw) == weights

        tl = _pick_lane_tile(Ho * Wo)
        out = _conv_bn_matmul(a, w_g, bias_g, tl)                 # (B, G, Cout_g, Ho*Wo)
        return out.reshape(B, Cout, Ho, Wo)                       # already NCHW, zero-copy reshape

    return forward


# -------------------------------------------------------------------------------------- reference
def _reference(x, w, bn, stride, padding, groups):
    conv = jax.lax.conv_general_dilated(
        x, w, window_strides=stride,
        padding=[(padding[0], padding[0]), (padding[1], padding[1])],
        dimension_numbers=('NCHW', 'OIHW', 'NCHW'), feature_group_count=groups)
    s = (bn['gamma'] / jnp.sqrt(bn['var'] + BN_EPS)).reshape(1, -1, 1, 1)
    b = (bn['beta'] - bn['mean'] * bn['gamma'] / jnp.sqrt(bn['var'] + BN_EPS)).reshape(1, -1, 1, 1)
    return conv * s + b


if __name__ == "__main__":
    key = jax.random.PRNGKey(0)
    B = 2

    def bn_init(k, c):
        kg, kb, km, kv = jax.random.split(k, 4)
        return {'gamma': 1.0 + 0.1 * jax.random.normal(kg, (c,), F32),
                'beta': 0.1 * jax.random.normal(kb, (c,), F32),
                'mean': 0.1 * jax.random.normal(km, (c,), F32),
                'var': 1.0 + 0.5 * jax.random.uniform(kv, (c,), F32)}

    configs = [
        # (in_c, out_c, kernel,  stride,  padding, groups, H,  W)
        (4, 32, (1, 1), (1, 1), (0, 0), 1, 16, 16),   # default Linear_block config
        (4, 64, (3, 3), (2, 2), (1, 1), 1, 16, 16),   # general KxK / strided path
        (4,  8, (1, 1), (1, 1), (0, 0), 2, 16, 16),   # grouped conv path
    ]

    for idx, (in_c, out_c, kernel, stride, padding, groups, H, W) in enumerate(configs):
        key, kx, kw, kb = jax.random.split(key, 4)
        x = jax.random.normal(kx, (B, in_c, H, W), F32)
        fan_in = (in_c // groups) * kernel[0] * kernel[1]
        w = math.sqrt(2.0 / fan_in) * jax.random.normal(
            kw, (out_c, in_c // groups, kernel[0], kernel[1]), F32)
        bn = bn_init(kb, out_c)

        fwd = make_linear_block(w, bn, kernel=kernel, stride=stride,
                                padding=padding, groups=groups)
        out = jax.block_until_ready(fwd(x))
        ref = _reference(x, w, bn, stride, padding, groups)

        assert out.shape == ref.shape, (idx, out.shape, ref.shape)
        assert bool(jnp.all(jnp.isfinite(out))), f"config {idx}: non-finite output"
        err = float(jnp.max(jnp.abs(out - ref)))
        assert err < 1e-1, f"config {idx}: max abs err {err}"   # bf16 MXU inputs, f32 accumulation

    print("KERNEL_OK")
</pallas_src>

<mosaic_0001>
module attributes {stable_mosaic.version = 11 : i64} {
  func.func @_conv_bn_kernel(%arg0: i32, %arg1: i32, %arg2: i32, %arg3: memref<1x1x4x256xf32, #tpu.memory_space<vmem>>, %arg4: memref<1x32x4xbf16, #tpu.memory_space<vmem>>, %arg5: memref<1x32x1xf32, #tpu.memory_space<vmem>>, %arg6: memref<1x1x32x256xf32, #tpu.memory_space<vmem>>) attributes {dimension_semantics = [#tpu.dimension_semantics<parallel>, #tpu.dimension_semantics<parallel>, #tpu.dimension_semantics<parallel>], iteration_bounds = array<i64: 2, 1, 1>, scalar_prefetch = 0 : i64, scratch_operands = 0 : i64, tpu.core_type = #tpu.core_type<tc>, window_params = [{transform_indices = @transform_0, window_bounds = array<i64: 1, 1, 4, 256>}, {transform_indices = @transform_1, window_bounds = array<i64: 1, 32, 4>}, {transform_indices = @transform_2, window_bounds = array<i64: 1, 32, 1>}, {transform_indices = @transform_3, window_bounds = array<i64: 1, 1, 32, 256>}]} {
    %c0 = arith.constant 0 : index
    %c0_0 = arith.constant 0 : index
    %c0_1 = arith.constant 0 : index
    %0 = vector.load %arg4[%c0, %c0_0, %c0_1] : memref<1x32x4xbf16, #tpu.memory_space<vmem>>, vector<1x32x4xbf16>
    %1 = vector.shape_cast %0 : vector<1x32x4xbf16> to vector<32x4xbf16>
    %c0_2 = arith.constant 0 : index
    %c0_3 = arith.constant 0 : index
    %c0_4 = arith.constant 0 : index
    %c0_5 = arith.constant 0 : index
    %2 = vector.load %arg3[%c0_2, %c0_3, %c0_4, %c0_5] : memref<1x1x4x256xf32, #tpu.memory_space<vmem>>, vector<1x1x4x256xf32>
    %3 = vector.shape_cast %2 : vector<1x1x4x256xf32> to vector<4x256xf32>
    %4 = arith.truncf %3 : vector<4x256xf32> to vector<4x256xbf16>
    %cst = arith.constant dense<0.000000e+00> : vector<32x256xf32>
    %5 = tpu.matmul %1, %4, %cst {dimension_numbers = #tpu.dot_dimension_numbers<[1], [0], [0], [1], [0, 0, 1, 1], [], []>} : vector<32x4xbf16>, vector<4x256xbf16>, vector<32x256xf32> -> vector<32x256xf32>
    %c0_6 = arith.constant 0 : index
    %c0_7 = arith.constant 0 : index
    %c0_8 = arith.constant 0 : index
    %6 = vector.load %arg5[%c0_6, %c0_7, %c0_8] : memref<1x32x1xf32, #tpu.memory_space<vmem>>, vector<1x32x1xf32>
    %7 = vector.shape_cast %6 : vector<1x32x1xf32> to vector<32x1xf32>
    %8 = vector.broadcast %7 : vector<32x1xf32> to vector<32x256xf32>
    %9 = arith.addf %5, %8 : vector<32x256xf32>
    %c0_9 = arith.constant 0 : index
    %c0_10 = arith.constant 0 : index
    %c0_11 = arith.constant 0 : index
    %c0_12 = arith.constant 0 : index
    %10 = vector.load %arg6[%c0_9, %c0_10, %c0_11, %c0_12] : memref<1x1x32x256xf32, #tpu.memory_space<vmem>>, vector<1x1x32x256xf32>
    %11 = vector.shape_cast %10 : vector<1x1x32x256xf32> to vector<32x256xf32>
    %12 = vector.shape_cast %9 : vector<32x256xf32> to vector<1x1x32x256xf32>
    tpu.vector_store %arg6[%c0_9, %c0_10, %c0_11, %c0_12], %12 {strides = array<i32>} : memref<1x1x32x256xf32, #tpu.memory_space<vmem>>, vector<1x1x32x256xf32>,
    return
  }
  func.func @transform_0(%arg0: i32, %arg1: i32, %arg2: i32) -> (i32, i32, i32, i32) {
    %c0_i32 = arith.constant 0 : i32
    %c0_i32_0 = arith.constant 0 : i32
    return %arg0, %arg1, %c0_i32, %arg2 : i32, i32, i32, i32
  }
  func.func @transform_1(%arg0: i32, %arg1: i32, %arg2: i32) -> (i32, i32, i32) {
    %c0_i32 = arith.constant 0 : i32
    %c0_i32_0 = arith.constant 0 : i32
    %c0_i32_1 = arith.constant 0 : i32
    return %arg1, %c0_i32, %c0_i32_0 : i32, i32, i32
  }
  func.func @transform_2(%arg0: i32, %arg1: i32, %arg2: i32) -> (i32, i32, i32) {
    %c0_i32 = arith.constant 0 : i32
    %c0_i32_0 = arith.constant 0 : i32
    %c0_i32_1 = arith.constant 0 : i32
    return %arg1, %c0_i32, %c0_i32_0 : i32, i32, i32
  }
  func.func @transform_3(%arg0: i32, %arg1: i32, %arg2: i32) -> (i32, i32, i32, i32) {
    %c0_i32 = arith.constant 0 : i32
    %c0_i32_0 = arith.constant 0 : i32
    return %arg0, %arg1, %c0_i32, %arg2 : i32, i32, i32, i32
  }
}

</mosaic_0001>

<bundles_post_ra>
// kernel: forward.1
= control target key start
LH: loop header
LB: loop body
LE: loop exit
PB: predicated region body
PF: predicated region fallthrough
CT: control target
= control target key end

     0   :  { %s640_s12 = smov 0   ;;  %s642_s13 = smov 0   ;;  %s695_s0 = inlined_call_operand.vmem [shape: f32[2,1,4,256], index: 0, kind: input, shape index: {}]   ;;  %s696_s1 = inlined_call_operand.vmem [shape: bf16[1,32,4], index: 1, kind: input, shape index: {}]   ;;  %s697_s2 = inlined_call_operand.vmem [shape: f32[1,32,1], index: 2, kind: input, shape index: {}]   ;;  %s698_s3 = inlined_call_operand.vmem [shape: f32[2,1,32,256], index: 3, kind: output, shape index: {}]  }
   0x1   :  { %s644_s14 = smov 0  }
   0x2 LB: > { %s32_s15 = sadd.s32 1, %s613_s13  ;;  %p549_p0 = scmp.ge.s32.totalorder %s617_s14, 1  ;;  %s617_s14 = sphi %s644_s14, %s13_s14   ;;  %s613_s13 = sphi %s642_s13, %s700_s13   ;;  %s609_s12 = sphi %s640_s12, %s699_s12  }
   0x3   : > { %p34_p1 = scmp.ge.s32.totalorder %s32_s15, 2  ;;  %p193_p2 = scmp.lt.s32.totalorder %s617_s14, 3 }
   0x5   : > { %s702_s15 = smov (%p34_p1, %s32_s15), 0  ;;  %p194_p3 = pnand %p549_p0, %p193_p2 }
   0x6   : > { %p244_p4 = scmp.lt.s32.totalorder (!%p194_p3), %s609_s12, 1 }
   0x7   : > { %197 = sbr.rel (%p194_p3) target bundleno = 226 (0xe2), region = 32 }
   0xc   : > { %v619_v0 = vmov 0   ;;  %s704_s12 = smov (!%p244_p4, %s609_s12), 1  ;;  %v294_v1 = vld [vmem:[%s697_s2 + $0x10] sm:$0xff]  ;;  %v292_v2 = vld [vmem:[%s697_s2] sm:$0xff]  ;;  %v295_v3 = vld [vmem:[%s697_s2 + $0x18] sm:$0xff]  ;;  %vm333_vm0 = vcmask 1041408  }
   0xd   : > { %372 = vmatprep.mubr.bf16.mxu0 %v619_v0  ;;  %382 = vmatprep.mubr.bf16.mxu1 %v619_v0  ;;  %s561_s20 = sshll.u32 %s704_s12, 3  ;;  %v293_v4 = vld [vmem:[%s697_s2 + $0x8] sm:$0xff]  ;;  %v593_v10 = vld [vmem:[%s696_s1] sm:$0xff]   ;;  %vm326_vm1 = vcmask 31744   ;;  %s562_s5 = sshll.u32 %s704_s12, 6 }
   0xe   : > { %591 = vset.pattern.permute.xlu1 %v619_v0  ;;  %590 = vset.pattern.permute.xlu0 %v619_v0  ;;  %s255_s27 = scalar_lea.vmem %s695_s0, %s561_s20  ;;  %v594_v11 = vld [vmem:[%s696_s1 + $0x8] sm:$0xff]   ;;  %s279_s8 = scalar_lea.vmem %s698_s3, %s562_s5 }
   0xf   : > { %308 = vperm.xlu1 %591, %v294_v1   ;;  %298 = vperm.xlu0 %590, %v292_v2   ;;  %v286_v5 = vld [vmem:[%s255_s27] sm:$0xff] }
  0x10   : > { %v288_v6 = vcombine.high %v286_v5, %v286_v5  ;;  %v290_v7 = vpack.c.bf16 %v286_v5, %v286_v5 }
  0x12   : > { %v291_v8 = vpack.c.bf16 %v288_v6, %v288_v6  ;;  %v335_v9 = vsel %vm333_vm0, %v290_v7, 0 }
  0x13   : > { %313 = vperm.xlu1 %591, %v295_v3   ;;  %303 = vperm.xlu0 %590, %v293_v4  }
  0x14   : > { %556 = vmatprep.subr.msk.bf16.mxu0 %vm333_vm0, %v291_v8  ;;  %563 = vmatprep.subr.msk.bf16.mxu1 %vm333_vm0, %v291_v8 }
  0x15   : > { %355 = vmatpush1.bf16.msra.mxu0 %v335_v9  ;;  %564 = vmatpush1.bf16.msra.mxu1 %v335_v9 }
  0x18   : > { %557 = vmatmul.mubr.msk.bf16.vlgmr.msra.gmra.mxu0 %vm326_vm1, %v593_v10  ;;  %558 = vmatmul.mubr.msk.bf16.vlgmr.msra.gmra.mxu1 %vm326_vm1, %v594_v11 }
  0x8a   : > { %v309_v12 = vpop.permute.xlu1 %308  ;;  %v299_v13 = vpop.permute.xlu0 %298 }
  0x8e   : > { %v314_v20 = vpop.permute.xlu1 %313  ;;  %v304_v21 = vpop.permute.xlu0 %303 }
  0xd8   : > { %v374_v14 = vpop.f32.mrf.mxu0  ;;  %v384_v15 = vpop.f32.mrf.mxu1 }
  0xd9   : > { %v375_v16 = vadd.f32 %v374_v14, %v299_v13  ;;  %v385_v17 = vadd.f32 %v384_v15, %v309_v12 }
  0xda   : > { %v376_v18 = vpop.f32.mrf.mxu0  ;;  %v386_v19 = vpop.f32.mrf.mxu1 }
  0xdb   : > { %393 = vst [vmem:[%s279_s8] sm:$0xff] %v375_v16  ;;  %397 = vst [vmem:[%s279_s8 + $0x20] sm:$0xff] %v385_v17  ;;  %v377_v22 = vadd.f32 %v376_v18, %v299_v13  ;;  %v387_v23 = vadd.f32 %v386_v19, %v309_v12 }
  0xdc   : > { %v378_v24 = vpop.f32.mrf.mxu0  ;;  %v388_v25 = vpop.f32.mrf.mxu1 }
  0xdd   : > { %394 = vst [vmem:[%s279_s8 + $0x8] sm:$0xff] %v377_v22  ;;  %398 = vst [vmem:[%s279_s8 + $0x28] sm:$0xff] %v387_v23  ;;  %v379_v26 = vadd.f32 %v378_v24, %v304_v21  ;;  %v389_v27 = vadd.f32 %v388_v25, %v314_v20 }
  0xde   : > { %v380_v28 = vpop.f32.mrf.mxu0  ;;  %v390_v29 = vpop.f32.mrf.mxu1 }
  0xdf   : > { %395 = vst [vmem:[%s279_s8 + $0x10] sm:$0xff] %v379_v26  ;;  %399 = vst [vmem:[%s279_s8 + $0x30] sm:$0xff] %v389_v27  ;;  %v381_v30 = vadd.f32 %v380_v28, %v304_v21  ;;  %v391_v31 = vadd.f32 %v390_v29, %v314_v20 }
  0xe1   : > { %396 = vst [vmem:[%s279_s8 + $0x18] sm:$0xff] %v381_v30  ;;  %400 = vst [vmem:[%s279_s8 + $0x38] sm:$0xff] %v391_v31 }
  0xe2 PF: > { %s13_s14 = sadd.s32 1, %s617_s14   ;;  %s699_s12 = smov %s613_s13 }
  0xe3   : > { %p10_p5 = scmp.ge.s32.totalorder %s13_s14, 4   ;;  %s700_s13 = smov %s702_s15 }
  0xe5   :  { %12 = sbr.rel (!%p10_p5) target bundleno = 2 (0x2), region = 68 }

</bundles_post_ra>
